<compile_context>
chip_gen: v6e
topology: v6e:2x2x1
jax: 0.10.0
libtpu: 0.0.40
codegen_flags: <defaults>
</compile_context>

<pallas_src>
import functools

import jax
import jax.numpy as jnp
from jax.experimental import pallas as pl
from jax.experimental.pallas import tpu as pltpu


# ----------------------------- Pallas kernel -----------------------------

def _conv1d_same_kernel(x_ref, w_ref, o_ref, *, bb, seq_len, ksize, pad):
    """x_ref: [bb, S, H_in]   (bb batch elements folded into one row tile)
       w_ref: [K*H_in, H_out] (tap-major im2col weight matrix)
       o_ref: [bb, S, H_out]

       y[b, t, :] = sum_k x[b, t + k - pad, :] @ w[k]   (torch Conv1d, no bias, 'same' pad)
    """
    h_in = x_ref.shape[-1]
    n_rows = bb * seq_len

    # Merge (bb, S) -> rows; H stays on the lane axis, so this reshape is free.
    x = x_ref[...].reshape(n_rows, h_in)                       # bf16, [bb*S, H_in]

    # Row position inside its own sequence (only needed to mask cross-batch bleed
    # when several batch elements share this block).
    if bb > 1:
        t_in_seq = jax.lax.broadcasted_iota(jnp.int32, (n_rows, 1), 0) % seq_len

    pieces = []
    for k in range(ksize):                                     # static unroll over taps
        s = k - pad                                            # shift of this tap
        if s == 0:
            piece = x
        elif s > 0:
            # rows t -> x[t + s], zeros past the end of the block
            piece = jnp.concatenate(
                [x[s:], jnp.zeros((s, h_in), x.dtype)], axis=0)
        else:
            # rows t -> x[t + s], zeros before the start of the block
            piece = jnp.concatenate(
                [jnp.zeros((-s, h_in), x.dtype), x[: n_rows + s]], axis=0)
        if bb > 1 and s != 0:
            # zero contributions that would bleed across folded batch elements
            valid = jnp.logical_and(t_in_seq + s >= 0, t_in_seq + s < seq_len)
            piece = jnp.where(valid, piece, jnp.zeros_like(piece))
        pieces.append(piece)

    # im2col tile: lane-axis concat of full-width pieces (vreg placement only).
    lhs = jnp.concatenate(pieces, axis=-1)                     # [bb*S, K*H_in] bf16

    # Single wide-contraction MXU matmul, f32 accumulation.
    acc = jnp.dot(lhs, w_ref[...], preferred_element_type=jnp.float32)

    o_ref[...] = acc.reshape(bb, seq_len, -1).astype(o_ref.dtype)


# ----------------------------- wrapper -----------------------------

def conv1d_same(x, w_torch, *, block_batch=None):
    """x: [B, S, H_in] float32, w_torch: [H_out, H_in, K] (torch Conv1d layout).

    Returns [B, S, H_out] float32 == CNN.forward(x)."""
    B, S, H_in = x.shape
    H_out, H_in2, K = w_torch.shape
    assert H_in2 == H_in
    assert K % 2 == 1, "even kernel_size unsupported: torch 'same' padding changes length"
    pad = (K - 1) // 2

    # [O, I, K] -> [K, I, O] -> [K*I, O]: ready-to-use im2col weight matrix.
    w_mat = jnp.transpose(w_torch, (2, 1, 0)).reshape(K * H_in, H_out)

    # bf16 operands, f32 accumulation happens on the MXU inside the kernel.
    xb = x.astype(jnp.bfloat16)
    wb = w_mat.astype(jnp.bfloat16)

    # Fold enough batch elements into each block to give the MXU >= ~128 rows.
    if block_batch is None:
        bb = min(B, max(1, 128 // max(S, 1)))
        while B % bb != 0:
            bb -= 1
    else:
        bb = block_batch
    assert B % bb == 0

    grid = (B // bb,)
    flops = 2 * B * S * K * H_in * H_out
    bytes_accessed = xb.size * 2 + wb.size * 2 + B * S * H_out * 4

    kern = functools.partial(_conv1d_same_kernel, bb=bb, seq_len=S, ksize=K, pad=pad)
    return pl.pallas_call(
        kern,
        out_shape=jax.ShapeDtypeStruct((B, S, H_out), jnp.float32),
        grid=grid,
        in_specs=[
            # bb batch elements' activations per grid step (last two dims = full array dims).
            pl.BlockSpec((bb, S, H_in), lambda i: (i, 0, 0)),
            # Constant index map -> the [K*H_in, H_out] slab is loaded into VMEM once.
            pl.BlockSpec((K * H_in, H_out), lambda i: (0, 0)),
        ],
        out_specs=pl.BlockSpec((bb, S, H_out), lambda i: (i, 0, 0)),
        compiler_params=pltpu.CompilerParams(dimension_semantics=("parallel",)),
        cost_estimate=pl.CostEstimate(
            flops=flops, transcendentals=0, bytes_accessed=bytes_accessed),
    )(xb, wb)


# ----------------------------- main -----------------------------

if __name__ == "__main__":
    key = jax.random.PRNGKey(0)

    def run_case(B, S, H, K):
        kx, kw = jax.random.split(jax.random.fold_in(key, B * 100000 + S * 100 + K))
        x = jax.random.normal(kx, (B, S, H), dtype=jnp.float32)
        # torch nn.Conv1d weight layout: [out_channels, in_channels, kernel_size]
        w = (1.0 / (H * K) ** 0.5) * jax.random.normal(kw, (H, H, K), dtype=jnp.float32)

        out = conv1d_same(x, w)
        out = jax.block_until_ready(out)

        pad = (K - 1) // 2
        ref = jax.lax.conv_general_dilated(
            jnp.transpose(x, (0, 2, 1)),        # [B, H, S]
            w,                                  # [O, I, K]
            window_strides=(1,),
            padding=[(pad, pad)],
            dimension_numbers=("NCH", "OIH", "NCH"),
            precision=jax.lax.Precision.HIGHEST)
        ref = jnp.transpose(ref, (0, 2, 1))     # [B, S, H]

        assert out.shape == (B, S, H)
        assert out.dtype == jnp.float32
        assert bool(jnp.all(jnp.isfinite(out)))
        max_err = float(jnp.max(jnp.abs(out - ref)))
        assert bool(jnp.allclose(out, ref, atol=5e-2, rtol=5e-2)), max_err

    # Case 1: S >= 128 -> one full-MXU 128-row tile per batch element (4 grid steps).
    run_case(B=4, S=128, H=128, K=3)
    # Case 2: short sequences -> two batch elements folded per block (bb=2), K=5 taps.
    run_case(B=4, S=64, H=128, K=5)

    print("KERNEL_OK")
</pallas_src>

<mosaic_0001>
module attributes {stable_mosaic.version = 11 : i64} {
  func.func @_conv1d_same_kernel(%arg0: i32, %arg1: memref<1x128x128xbf16, #tpu.memory_space<vmem>>, %arg2: memref<384x128xbf16, #tpu.memory_space<vmem>>, %arg3: memref<1x128x128xf32, #tpu.memory_space<vmem>>) attributes {dimension_semantics = [#tpu.dimension_semantics<parallel>], iteration_bounds = array<i64: 4>, scalar_prefetch = 0 : i64, scratch_operands = 0 : i64, tpu.core_type = #tpu.core_type<tc>, window_params = [{transform_indices = @transform_0, window_bounds = array<i64: 1, 128, 128>}, {pipeline_mode = #tpu.pipeline_mode<synchronous>, transform_indices = @transform_1, window_bounds = array<i64: 384, 128>}, {transform_indices = @transform_2, window_bounds = array<i64: 1, 128, 128>}]} {
    %c0 = arith.constant 0 : index
    %c0_0 = arith.constant 0 : index
    %c0_1 = arith.constant 0 : index
    %0 = vector.load %arg1[%c0, %c0_0, %c0_1] : memref<1x128x128xbf16, #tpu.memory_space<vmem>>, vector<1x128x128xbf16>
    %1 = vector.shape_cast %0 : vector<1x128x128xbf16> to vector<128x128xbf16>
    %cst = arith.constant 0.000000e+00 : bf16
    %2 = vector.broadcast %cst : bf16 to vector<1x128xbf16>
    %3 = vector.extract_strided_slice %1 {offsets = [0, 0], sizes = [127, 128], strides = [1, 1]} : vector<128x128xbf16> to vector<127x128xbf16>
    %4 = tpu.concatenate %2, %3 in 0 : vector<1x128xbf16>, vector<127x128xbf16> -> vector<128x128xbf16>
    %5 = vector.extract_strided_slice %1 {offsets = [1, 0], sizes = [127, 128], strides = [1, 1]} : vector<128x128xbf16> to vector<127x128xbf16>
    %cst_2 = arith.constant 0.000000e+00 : bf16
    %6 = vector.broadcast %cst_2 : bf16 to vector<1x128xbf16>
    %7 = tpu.concatenate %5, %6 in 0 : vector<127x128xbf16>, vector<1x128xbf16> -> vector<128x128xbf16>
    %8 = tpu.concatenate %4, %1, %7 in 1 : vector<128x128xbf16>, vector<128x128xbf16>, vector<128x128xbf16> -> vector<128x384xbf16>
    %c0_3 = arith.constant 0 : index
    %c0_4 = arith.constant 0 : index
    %9 = vector.load %arg2[%c0_3, %c0_4] : memref<384x128xbf16, #tpu.memory_space<vmem>>, vector<384x128xbf16>
    %cst_5 = arith.constant dense<0.000000e+00> : vector<128x128xf32>
    %10 = tpu.matmul %8, %9, %cst_5 {dimension_numbers = #tpu.dot_dimension_numbers<[1], [0], [0], [1], [0, 0, 1, 1], [], []>} : vector<128x384xbf16>, vector<384x128xbf16>, vector<128x128xf32> -> vector<128x128xf32>
    %11 = vector.shape_cast %10 : vector<128x128xf32> to vector<1x128x128xf32>
    %c0_6 = arith.constant 0 : index
    %c0_7 = arith.constant 0 : index
    %c0_8 = arith.constant 0 : index
    %12 = vector.load %arg3[%c0_6, %c0_7, %c0_8] : memref<1x128x128xf32, #tpu.memory_space<vmem>>, vector<1x128x128xf32>
    tpu.vector_store %arg3[%c0_6, %c0_7, %c0_8], %11 {strides = array<i32>} : memref<1x128x128xf32, #tpu.memory_space<vmem>>, vector<1x128x128xf32>,
    return
  }
  func.func @transform_0(%arg0: i32) -> (i32, i32, i32) {
    %c0_i32 = arith.constant 0 : i32
    %c0_i32_0 = arith.constant 0 : i32
    %c0_i32_1 = arith.constant 0 : i32
    return %arg0, %c0_i32, %c0_i32_0 : i32, i32, i32
  }
  func.func @transform_1(%arg0: i32) -> (i32, i32) {
    %c0_i32 = arith.constant 0 : i32
    %c0_i32_0 = arith.constant 0 : i32
    %c0_i32_1 = arith.constant 0 : i32
    return %c0_i32, %c0_i32_0 : i32, i32
  }
  func.func @transform_2(%arg0: i32) -> (i32, i32, i32) {
    %c0_i32 = arith.constant 0 : i32
    %c0_i32_0 = arith.constant 0 : i32
    %c0_i32_1 = arith.constant 0 : i32
    return %arg0, %c0_i32, %c0_i32_0 : i32, i32, i32
  }
}

</mosaic_0001>

<bundles_post_ra>
// kernel: tpu_custom_call.1
= control target key start
LH: loop header
LB: loop body
LE: loop exit
PB: predicated region body
PF: predicated region fallthrough
CT: control target
= control target key end

     0   :  { %7 = vsyncpa [#allocation3], 0  ;;  %s1501_s0 = inlined_call_operand.hbm [shape: bf16[4,128,128], index: 0, kind: input, shape index: {}]   ;;  %s1502_s1 = inlined_call_operand.hbm [shape: bf16[384,128], index: 1, kind: input, shape index: {}]   ;;  %s1503_s2 = inlined_call_operand.hbm [shape: f32[4,128,128], index: 2, kind: output, shape index: {}]  }
   0x1   :  { %9 = vsyncpa [#allocation3 + $0x1], 0 }
   0x2   :  { %10 = vsyncpa [#allocation6], 0 }
   0x3   :  { %11 = vsyncpa [#allocation4], 0 }
   0x4   :  { %13 = vsyncpa [#allocation4 + $0x1], 0  ;;  %s1252_s9 = smov 0   ;;  %s1254_s10 = smov 0  }
   0x5   :  { %s1256_s11 = smov 0   ;;  %s1258_s12 = smov 0  }
   0x6 LB: > { %s1273_s13 = sadd.s32 4294967295, %s1228_s12   ;;  %s851_s14 = sadd.s32 4294967294, %s1228_s12   ;;  %s1228_s12 = sphi %s1258_s12, %s1526_s12   ;;  %s1224_s11 = sphi %s1256_s11, %s1525_s11   ;;  %s1220_s10 = sphi %s1254_s10, %s1524_s10   ;;  %s1216_s9 = sphi %s1252_s9, %s1523_s9  }
   0x7   : > { %p39_p0 = scmp.ne.s32.totalorder %s1220_s10, %s1216_s9  ;;  %p1504_p1 = scmp.eq.s32.totalorder %s1273_s13, 0 }
   0x8   : > { %p90_p3 = scmp.eq.s32.totalorder %s851_s14, 3  ;;  %p852_p5 = scmp.ge.s32.totalorder %s1228_s12, 1 }
   0x9   : > { %p1282_p4 = por %p1504_p1, %p39_p0  ;;  %p97_p7 = scmp.lt.s32.totalorder %s1228_s12, 5 }
   0xa   : > { %p1287_p6 = por %p90_p3, %p39_p0  ;;  %s1230_s18 = smov [#allocation5]  }
   0xb   : > { %s1508_s15 = scalar_select %p1282_p4, 1, 0 }
   0xc   : > { %s1509_s16 = scalar_select %p1287_p6, 1, 0 }
   0xd   : > { %p1292_p8 = pnand %p852_p5, %p97_p7  ;;  %s109_s19 = sshll.u32 %s1230_s18, 4  ;;  %s110_s19 = int_to_ptr.vmem [resolvable:$true] %s109_s19 }
   0xe   : > { %s1305_s21 = sadd.s32 1, %s1228_s12   ;;  %s26_s22 = sadd.s32 1, %s1224_s11 }
   0xf   : > { %s1510_s17 = scalar_select %p1292_p8, 1, 0 }
  0x10   : > { %p1021_p9 = pneg %p1292_p8  ;;  %s23_s23 = ssub.s32 %s1228_s12, %s1305_s21 }
  0x11   : > { %s1117_s24 = scalar_lea.vmem %s110_s19, 3072  ;;  %p1125_p3 = scmp.lt.s32.totalorder %s110_s19, %s110_s19 }
  0x12   : > { %p1300_p10 = pnand %p1021_p9, %p1504_p1  ;;  %p1118_p12 = scmp.ne.s32.totalorder %s110_s19, %s1117_s24 }
  0x13   : > { %p1126_p5 = scmp.lt.s32.totalorder %s1117_s24, %s1117_s24 }
  0x14   : > { %p1108_p11 = pneg %p1300_p10 }
  0x15   : > { %p1127_p7 = por %p1126_p5, %p1125_p3 }
  0x16   : > { %p1120_p13 = pnand %p1118_p12, %p1108_p11 }
  0x18   : > { %p1121_p0 = pneg %p1120_p13 }
  0x1a   : > { %p1128_p2 = pnand %p1127_p7, %p1121_p0 }
  0x1c   : > { %1131 = shalt.err (!%p1128_p2)
}
  0x1d   : > { %s1231_s25 = smov 64   ;;  %s1232_s26 = smov 4  }
  0x1e   : > { %1024 = dma.hbm_to_vmem [thread:$0]  (!%p1300_p10), %s1502_s1, 3072, %s110_s19, [#allocation6], %s1231_s25, %s1231_s25, %s1232_s26  }
  0x1f   : > { %p24_p2 = scmp.eq.s32.totalorder %s23_s23, 0  ;;  %p33_p9 = scmp.ne.s32.totalorder %s1224_s11, %s1220_s10 }
  0x20   : > { %p34_p11 = scmp.eq.s32.totalorder %s1228_s12, 0  ;;  %p1034_p12 = scmp.lt.s32.totalorder %s1228_s12, 4 }
  0x21   : > { %s1325_s29 = scalar_select %p24_p2, %s1224_s11, %s26_s22  }
  0x22   : > { %p35_p13 = por %p34_p11, %p33_p9  ;;  %p1512_p0 = scmp.eq.s32.totalorder %s1273_s13, 3 }
  0x23   : > { %s123_s3 = sand.u32 1, %s1224_s11   ;;  %s899_s4 = sshll.u32 %s1228_s12, 10 }
  0x24   : > { %p1329_p3 = por %p1512_p0, %p33_p9  ;;  %s855_s5 = sshll.u32 %s123_s3, 6 }
  0x25   : > { %s1338_s8 = scalar_lea.hbm %s1501_s0, %s899_s4  ;;  %s127_s14 = scalar_lea.vmem [#allocation2], %s855_s5 }
  0x26   : > { %s1513_s30 = scalar_select %p1329_p3, 1, 0 }
  0x27   : > { %s134_s18 = sshll.u32 %s127_s14, 4  ;;  %p1340_p10 = pnand %p1034_p12, %p35_p13  ;;  %s1344_s18 = int_to_ptr.vmem [resolvable:$true] %s134_s18 }
  0x28   : > { %s1346_s20 = scalar_lea.sflag [#allocation3], %s123_s3  ;;  %s1132_s22 = scalar_lea.hbm %s1338_s8, 1024 }
  0x29   : > { %p1133_p5 = scmp.ne.s32.totalorder %s1338_s8, %s1132_s22  ;;  %p1134_p7 = pneg %p1340_p10 }
  0x2a   : > { %s1137_s27 = scalar_lea.hbm %s1501_s0, 4096  ;;  %p1138_p11 = scmp.lt.s32.totalorder %s1338_s8, %s1501_s0 }
  0x2b   : > { %p1135_p2 = pnand %p1134_p7, %p1133_p5  ;;  %p1139_p12 = scmp.lt.s32.totalorder %s1137_s27, %s1132_s22 }
  0x2d   : > { %p1136_p9 = pneg %p1135_p2  ;;  %p1140_p13 = por %p1139_p12, %p1138_p11 }
  0x2f   : > { %p1141_p0 = pnand %p1140_p13, %p1136_p9 }
  0x31   : > { %1144 = shalt.err (!%p1141_p0)
}
  0x32   : > { %s1145_s3 = scalar_lea.vmem %s1344_s18, 1024  ;;  %s1233_s5 = smov [#allocation2]  }
  0x33   : > { %p1146_p1 = scmp.ne.s32.totalorder %s1344_s18, %s1145_s3  ;;  %s1150_s6 = sshll.u32 %s1233_s5, 4  ;;  %s1151_s6 = int_to_ptr.vmem [resolvable:$false] %s1150_s6 }
  0x34   : > { %s1152_s7 = scalar_lea.vmem %s1151_s6, 2048  ;;  %p1153_p2 = scmp.lt.s32.totalorder %s1344_s18, %s1151_s6 }
  0x35   : > { %p1148_p6 = pnand %p1146_p1, %p1134_p7  ;;  %p1154_p3 = scmp.lt.s32.totalorder %s1152_s7, %s1145_s3 }
  0x37   : > { %p1149_p5 = pneg %p1148_p6  ;;  %p1155_p4 = por %p1154_p3, %p1153_p2 }
  0x39   : > { %p1156_p8 = pnand %p1155_p4, %p1149_p5 }
  0x3b   : > { %1159 = shalt.err (!%p1156_p8)
}
  0x3c   : > { %1028 = dma.hbm_to_vmem [thread:$0]  (!%p1340_p10), %s1338_s8, 1024, %s1344_s18, %s1346_s20, %s1231_s25, %s1231_s25, %s1232_s26  }
  0x3d   : > { %p1515_p1 = scmp.ne.s32.totalorder %s1510_s17, 0 }
  0x3e   : > { %s1373_s14 = sand.u32 (!%p1515_p1), 1, %s1220_s10   ;;  %p1516_p4 = scmp.ne.s32.totalorder (!%p1515_p1), %s1508_s15, 0 }
  0x3f   : > { %146 = sbr.rel (%p1515_p1) target bundleno = 378 (0x17a), region = 28  ;;  %s859_s22 = sshll.u32 (!%p1515_p1), %s1373_s14, 6 }
  0x40   : > { %s149_s23 = scalar_lea.sflag (!%p1515_p1), [#allocation3], %s1373_s14  ;;  %s1377_s24 = scalar_lea.vmem (!%p1515_p1), [#allocation2], %s859_s22 }
  0x44   : > { %1203 = dma.done.wait (%p1516_p4), %s149_s23, 1024  }
  0x45   : > { %1205 = vsyncadd (%p1516_p4), %s149_s23, 4294966272  ;;  %p1517_p6 = scmp.eq.s32.totalorder %s1273_s13, 0 }
  0x47   : > { %1207 = dma.done.wait (%p1517_p6), [#allocation6], 3072   ;;  %p1518_p8 = pmov %p1517_p6 }
  0x48   : > { %v1074_v0 = vld [vmem:[#allocation5 + $0x78] sm:$0xff]   ;;  %v1077_v3 = vld [vmem:[#allocation5 + $0x70] sm:$0xff]   ;;  %v1080_v6 = vld [vmem:[#allocation5 + $0x68] sm:$0xff]   ;;  %vm234_vm0 = vsmask.f32 256  ;;  %vm306_vm2 = vcmask 1040384  }
  0x49   : > { %1209 = vsyncadd (%p1518_p8), [#allocation6], 4294964224  ;;  %v1075_v1 = vld [vmem:[#allocation5 + $0x38] sm:$0xff]   ;;  %901 = vmatprep.subr.bf16.mxu0 %v1074_v0  ;;  %v1078_v4 = vld [vmem:[#allocation5 + $0x30] sm:$0xff]   ;;  %vm309_vm1 = vsmask.f32 7424 }
  0x4a   : > { %v1076_v2 = vld [vmem:[#allocation5 + $0xb8] sm:$0xff]   ;;  %902 = vmatpush3.bf16.msra.mxu0 %v1075_v1  ;;  %v1079_v5 = vld [vmem:[#allocation5 + $0xb0] sm:$0xff]   ;;  %v1081_v7 = vld [vmem:[#allocation5 + $0x28] sm:$0xff]   ;;  %vm341_vm4 = vcmask 1047552   ;;  %s861_s15 = sshll.u32 %s1373_s14, 7  ;;  %s900_s25 = sshll.u32 %s1273_s13, 11 }
  0x4b   : > { %981 = vmatprep.subr.bf16.mxu1 %v1076_v2  ;;  %903 = vmatprep.subr.bf16.mxu0 %v1077_v3  ;;  %v1082_v8 = vld [vmem:[#allocation5 + $0xa8] sm:$0xff]   ;;  %v1083_v9 = vld [vmem:[#allocation5 + $0x60] sm:$0xff]   ;;  %v1086_v12 = vld [vmem:[#allocation5 + $0x58] sm:$0xff]   ;;  %s1434_s17 = scalar_lea.vmem [#allocation7], %s861_s15  ;;  %s1456_s19 = scalar_lea.hbm %s1503_s2, %s900_s25 }
  0x4c   : > { %982 = vmatpush3.bf16.msra.mxu1 %v1076_v2  ;;  %v1084_v10 = vld [vmem:[#allocation5 + $0x20] sm:$0xff]   ;;  %v1088_v13 = vld [vmem:[#allocation5 + $0x98] sm:$0xff]   ;;  %v1089_v15 = vld [vmem:[#allocation5 + $0x50] sm:$0xff]   ;;  %s768_s26 = sshll.u32 %s1434_s17, 4  ;;  %s755_s20 = scalar_lea.sflag [#allocation4], %s1373_s14  ;;  %s1458_s26 = int_to_ptr.vmem [resolvable:$true] %s768_s26 }
  0x4d   : > { %983 = vmatprep.subr.bf16.mxu1 %v1079_v5  ;;  %v1085_v11 = vld [vmem:[#allocation5 + $0xa0] sm:$0xff]   ;;  %v1087_v14 = vld [vmem:[#allocation5 + $0x18] sm:$0xff]   ;;  %v1091_v16 = vld [vmem:[#allocation5 + $0x90] sm:$0xff]   ;;  %s1160_s27 = scalar_lea.vmem %s1458_s26, 2048  ;;  %p1521_p10 = scmp.ne.s32.totalorder %s1513_s30, 0 }
  0x4e   : > { %904 = vmatpush3.bf16.msra.mxu0 %v1078_v4  ;;  %v1090_v17 = vld [vmem:[#allocation5 + $0x10] sm:$0xff]   ;;  %v1092_v18 = vld [vmem:[#allocation5 + $0x48] sm:$0xff]   ;;  %v1095_v21 = vld [vmem:[#allocation5 + $0x40] sm:$0xff]   ;;  %p1161_p3 = scmp.ne.s32.totalorder %s1458_s26, %s1160_s27  ;;  %s1234_s13 = smov [#allocation7]  }
  0x4f   : > { %905 = vmatprep.subr.bf16.mxu0 %v1080_v6  ;;  %v1093_v19 = vld [vmem:[#allocation5 + $0x8] sm:$0xff]   ;;  %v1097_v22 = vld [vmem:[#allocation5 + $0x80] sm:$0xff]   ;;  %v1100_v29 = vld [vmem:[%s1377_s24 + $0x10] sm:$0xff]   ;;  %s1164_s28 = sshll.u32 %s1234_s13, 4  ;;  %s1165_s28 = int_to_ptr.vmem [resolvable:$false] %s1164_s28 }
  0x50   : > { %984 = vmatpush3.bf16.msra.mxu1 %v1079_v5  ;;  %v1094_v20 = vld [vmem:[#allocation5 + $0x88] sm:$0xff]   ;;  %v1098_v23 = vld [vmem:[%s1377_s24] sm:$0xff]   ;;  %v1391_v31 = vld [vmem:[%s1377_s24 + $0x18] sm:$0xff]   ;;  %v254_v36 = vshll.u32 %v1100_v29, 16  ;;  %v251_v40 = vshrl.u32 %v1100_v29, 16  ;;  %p1162_p7 = pnand %p1161_p3, %p1521_p10  ;;  %s1166_s4 = scalar_lea.vmem %s1165_s28, 4096 }
  0x51   : > { %985 = vmatprep.subr.bf16.mxu1 %v1082_v8  ;;  %v1096_v24 = vld [vmem:[#allocation5] sm:$0xff]   ;;  %v1099_v25 = vld [vmem:[%s1377_s24 + $0x8] sm:$0xff]   ;;  %576 = vmatprep.mubr.bf16.mxu0 %v1098_v23  ;;  %v236_v26 = vshrl.u32 %v1098_v23, 16  ;;  %v239_v27 = vshll.u32 %v1098_v23, 16  ;;  %vm1395_vm3 = vmand %vm306_vm2, %vm234_vm0  ;;  %v262_v41 = vshll.u32 %v1391_v31, 16  ;;  %v259_v51 = vshrl.u32 %v1391_v31, 16  ;;  %p1167_p11 = scmp.lt.s32.totalorder %s1458_s26, %s1165_s28  ;;  %p1168_p12 = scmp.lt.s32.totalorder %s1166_s4, %s1160_s27 }
  0x52   : > { %906 = vmatpush3.bf16.msra.mxu0 %v1081_v7  ;;  %v246_v28 = vshll.u32 %v1099_v25, 16  ;;  %v243_v30 = vshrl.u32 %v1099_v25, 16  ;;  %v1401_v42 = vld [vmem:[%s1377_s24 + $0x20] sm:$0xff]   ;;  %v315_v44 = vrot.slane %v254_v36, 1  ;;  %v1404_v45 = vld [vmem:[%s1377_s24 + $0x28] sm:$0xff]   ;;  %v1104_v58 = vld [vmem:[%s1377_s24 + $0x30] sm:$0xff]   ;;  %p1163_p9 = pneg %p1162_p7 }
  0x53   : > { %907 = vmatprep.subr.bf16.mxu0 %v1083_v9  ;;  %v238_v32 = vrot.slane %v236_v26, 7  ;;  %v310_v33 = vrot.slane %v239_v27, 1  ;;  %v318_v48 = vrot.slane %v262_v41, 1  ;;  %v270_v49 = vshll.u32 %v1401_v42, 16  ;;  %v1105_v62 = vld [vmem:[%s1377_s24 + $0x38] sm:$0xff]   ;;  %vm342_vm5 = vmand %vm341_vm4, %vm309_vm1  ;;  %p1169_p13 = por %p1168_p12, %p1167_p11 }
  0x54   : > { %986 = vmatpush3.bf16.msra.mxu1 %v1082_v8  ;;  %v312_v35 = vrot.slane %v246_v28, 1  ;;  %v245_v37 = vrot.slane %v243_v30, 7  ;;  %v317_v52 = vor.u32 %v315_v44, %v251_v40  ;;  %v278_v54 = vshll.u32 %v1404_v45, 16 }
  0x55   : > { %987 = vmatprep.subr.bf16.mxu1 %v1085_v11  ;;  %v241_v38 = vor.u32 %v239_v27, %v238_v32  ;;  %v311_v39 = vor.u32 %v310_v33, %v236_v26  ;;  %v321_v56 = vrot.slane %v270_v49, 1  ;;  %v267_v57 = vshrl.u32 %v1401_v42, 16  ;;  %p1170_p0 = pnand %p1169_p13, %p1163_p9 }
  0x56   : > { %908 = vmatpush3.bf16.msra.mxu0 %v1084_v10  ;;  %v314_v43 = vor.u32 %v312_v35, %v243_v30  ;;  %v248_v53 = vor.u32 %v246_v28, %v245_v37  ;;  %v319_v55 = vsel %vm309_vm1, %v317_v52, %v318_v48  ;;  %v320_v59 = vor.u32 %v318_v48, %v259_v51 }
  0x57   : > { %909 = vmatprep.subr.bf16.mxu0 %v1086_v12  ;;  %v308_v46 = vsel %vm1395_vm3, 0, %v241_v38  ;;  %v313_v47 = vsel %vm309_vm1, %v311_v39, %v312_v35  ;;  %v323_v60 = vor.u32 %v321_v56, %v267_v57  ;;  %v324_v61 = vrot.slane %v278_v54, 1 }
  0x58   : > { %988 = vmatpush3.bf16.msra.mxu1 %v1085_v11  ;;  %997 = vmatprep.mubr.bf16.mxu1 %v313_v47  ;;  %v316_v50 = vsel %vm309_vm1, %v314_v43, %v315_v44  ;;  %v249_v63 = vsel %vm234_vm0, %v238_v32, %v248_v53  ;;  %v253_v0 = vrot.slane %v251_v40, 7  ;;  %v286_v1 = vshll.u32 %v1104_v58, 16 }
  0x59   : > { %989 = vmatprep.subr.bf16.mxu1 %v1088_v13  ;;  %v322_v2 = vsel %vm309_vm1, %v320_v59, %v321_v56  ;;  %v275_v3 = vshrl.u32 %v1404_v45, 16  ;;  %v325_v4 = vsel %vm309_vm1, %v323_v60, %v324_v61  ;;  %v294_v5 = vshll.u32 %v1105_v62, 16 }
  0x5a   : > { %910 = vmatpush3.bf16.msra.mxu0 %v1087_v14  ;;  %v256_v6 = vor.u32 %v254_v36, %v253_v0  ;;  %v327_v7 = vrot.slane %v286_v1, 1  ;;  %v283_v8 = vshrl.u32 %v1104_v58, 16 }
  0x5b   : > { %911 = vmatprep.subr.bf16.mxu0 %v1089_v15  ;;  %v326_v9 = vor.u32 %v324_v61, %v275_v3  ;;  %v330_v11 = vrot.slane %v294_v5, 1  ;;  %v291_v15 = vshrl.u32 %v1105_v62, 16 }
  0x5c   : > { %990 = vmatpush3.bf16.msra.mxu1 %v1088_v13  ;;  %v329_v10 = vor.u32 %v327_v7, %v283_v8  ;;  %v257_v12 = vsel %vm234_vm0, %v245_v37, %v256_v6  ;;  %v261_v13 = vrot.slane %v259_v51, 7  ;;  %v285_v27 = vrot.slane %v283_v8, 7 }
  0x5d   : > { %991 = vmatprep.subr.bf16.mxu1 %v1091_v16  ;;  %v328_v14 = vsel %vm309_vm1, %v326_v9, %v327_v7  ;;  %v293_v30 = vrot.slane %v291_v15, 7 }
  0x5e   : > { %912 = vmatpush3.bf16.msra.mxu0 %v1090_v17  ;;  %v264_v17 = vor.u32 %v262_v41, %v261_v13  ;;  %v288_v28 = vor.u32 %v286_v1, %v285_v27 }
  0x5f   : > { %913 = vmatprep.subr.bf16.mxu0 %v1092_v18  ;;  %v332_v18 = vor.u32 %v330_v11, %v291_v15 }
  0x60   : > { %992 = vmatpush3.bf16.msra.mxu1 %v1091_v16  ;;  %v331_v16 = vsel %vm309_vm1, %v329_v10, %v330_v11 }
  0x61   : > { %993 = vmatprep.subr.bf16.mxu1 %v1094_v20 }
  0x62   : > { %914 = vmatpush3.bf16.msra.mxu0 %v1093_v19  ;;  %v265_v19 = vsel %vm234_vm0, %v253_v0, %v264_v17 }
  0x63   : > { %915 = vmatprep.subr.bf16.mxu0 %v1095_v21  ;;  %v343_v21 = vsel %vm342_vm5, %v332_v18, 0 }
  0x64   : > { %994 = vmatpush3.bf16.msra.mxu1 %v1094_v20  ;;  %v269_v20 = vrot.slane %v267_v57, 7 }
  0x65   : > { %995 = vmatprep.subr.bf16.mxu1 %v1097_v22 }
  0x66   : > { %916 = vmatpush3.bf16.msra.mxu0 %v1096_v24  ;;  %v277_v24 = vrot.slane %v275_v3, 7 }
  0x68   : > { %996 = vmatpush3.bf16.msra.mxu1 %v1097_v22  ;;  %v272_v22 = vor.u32 %v270_v49, %v269_v20 }
  0x69   : > { %577 = vmatmul.mubr.bf16.vlgmr.msra.gmra.mxu0 %v308_v46 }
  0x6a   : > { %584 = vmatprep.mubr.bf16.mxu0 %v1099_v25  ;;  %v273_v23 = vsel %vm234_vm0, %v261_v13, %v272_v22  ;;  %v280_v25 = vor.u32 %v278_v54, %v277_v24 }
  0x6b   : > { %998 = vmatmul.mubr.bf16.vlgmr.msra.gmra.mxu1 %v316_v50 }
  0x6c   : > { %1001 = vmatprep.mubr.bf16.mxu1 %v319_v55  ;;  %v281_v26 = vsel %vm234_vm0, %v269_v20, %v280_v25 }
  0x71   : > { %585 = vmatmul.mubr.bf16.gmra.mxu0 %v249_v63 }
  0x72   : > { %592 = vmatprep.mubr.bf16.mxu0 %v1100_v29  ;;  %v289_v29 = vsel %vm234_vm0, %v277_v24, %v288_v28 }
  0x73   : > { %1002 = vmatmul.mubr.bf16.gmra.mxu1 %v322_v2 }
  0x74   : > { %1005 = vmatprep.mubr.bf16.mxu1 %v325_v4 }
  0x79   : > { %593 = vmatmul.mubr.bf16.gmra.mxu0 %v257_v12 }
  0x7a   : > { %600 = vmatprep.mubr.bf16.mxu0 %v1391_v31  ;;  %v296_v31 = vor.u32 %v294_v5, %v293_v30 }
  0x7b   : > { %1006 = vmatmul.mubr.bf16.gmra.mxu1 %v328_v14 }
  0x7c   : > { %1009 = vmatprep.mubr.bf16.mxu1 %v331_v16  ;;  %v297_v32 = vsel %vm234_vm0, %v285_v27, %v296_v31 }
  0x81   : > { %601 = vmatmul.mubr.bf16.gmra.mxu0 %v265_v19 }
  0x82   : > { %608 = vmatprep.mubr.bf16.mxu0 %v1401_v42 }
  0x83   : > { %1010 = vmatmul.mubr.bf16.gmra.mxu1 %v343_v21 }
  0x89   : > { %609 = vmatmul.mubr.bf16.gmra.mxu0 %v273_v23 }
  0x8a   : > { %616 = vmatprep.mubr.bf16.mxu0 %v1404_v45 }
  0x91   : > { %617 = vmatmul.mubr.bf16.gmra.mxu0 %v281_v26 }
  0x92   : > { %624 = vmatprep.mubr.bf16.mxu0 %v1104_v58 }
  0x99   : > { %625 = vmatmul.mubr.bf16.gmra.mxu0 %v289_v29 }
  0x9a   : > { %632 = vmatprep.mubr.bf16.mxu0 %v1105_v62 }
  0xa1   : > { %633 = vmatmul.mubr.bf16.gmra.mxu0 %v297_v32 }
 0x129   : > { %v917_v33 = vpop.f32.mrf.mxu0 }
 0x12b   : > { %v918_v34 = vpop.f32.mrf.mxu0  ;;  %v999_v35 = vpop.f32.mrf.mxu1 }
 0x12c   : > { %v919_v36 = vadd.f32 %v918_v34, %v917_v33 }
 0x12d   : > { %v920_v37 = vpop.f32.mrf.mxu0  ;;  %v675_v38 = vpop.f32.mrf.mxu1 }
 0x12e   : > { %v676_v39 = vadd.f32 %v919_v36, %v675_v38 }
 0x12f   : > { %v921_v40 = vpop.f32.mrf.mxu0  ;;  %v1000_v41 = vpop.f32.mrf.mxu1 }
 0x130   : > { %738 = vst [vmem:[%s1434_s17] sm:$0xff] %v676_v39  ;;  %v922_v42 = vadd.f32 %v921_v40, %v920_v37 }
 0x131   : > { %v923_v43 = vpop.f32.mrf.mxu0  ;;  %v678_v44 = vpop.f32.mrf.mxu1 }
 0x132   : > { %v679_v45 = vadd.f32 %v922_v42, %v678_v44 }
 0x133   : > { %v924_v46 = vpop.f32.mrf.mxu0  ;;  %v1003_v47 = vpop.f32.mrf.mxu1 }
 0x134   : > { %739 = vst [vmem:[%s1434_s17 + $0x8] sm:$0xff] %v679_v45  ;;  %v925_v48 = vadd.f32 %v924_v46, %v923_v43 }
 0x135   : > { %v926_v49 = vpop.f32.mrf.mxu0  ;;  %v691_v52 = vpop.f32.mrf.mxu1 }
 0x136   : > { %v684_v50 = vadd.f32 %v999_v35, %v925_v48 }
 0x137   : > { %v927_v51 = vpop.f32.mrf.mxu0  ;;  %v1004_v57 = vpop.f32.mrf.mxu1 }
 0x138   : > { %740 = vst [vmem:[%s1434_s17 + $0x10] sm:$0xff] %v684_v50  ;;  %v928_v53 = vadd.f32 %v927_v51, %v926_v49 }
 0x139   : > { %v929_v54 = vpop.f32.mrf.mxu0  ;;  %v694_v62 = vpop.f32.mrf.mxu1 }
 0x13a   : > { %v687_v55 = vadd.f32 %v1000_v41, %v928_v53 }
 0x13b   : > { %v930_v56 = vpop.f32.mrf.mxu0  ;;  %v1007_v3 = vpop.f32.mrf.mxu1 }
 0x13c   : > { %741 = vst [vmem:[%s1434_s17 + $0x18] sm:$0xff] %v687_v55  ;;  %v931_v58 = vadd.f32 %v930_v56, %v929_v54 }
 0x13d   : > { %v932_v59 = vpop.f32.mrf.mxu0  ;;  %v707_v8 = vpop.f32.mrf.mxu1 }
 0x13e   : > { %v692_v60 = vadd.f32 %v931_v58, %v691_v52 }
 0x13f   : > { %v933_v61 = vpop.f32.mrf.mxu0  ;;  %v1008_v13 = vpop.f32.mrf.mxu1 }
 0x140   : > { %742 = vst [vmem:[%s1434_s17 + $0x20] sm:$0xff] %v692_v60  ;;  %v934_v63 = vadd.f32 %v933_v61, %v932_v59 }
 0x141   : > { %v935_v0 = vpop.f32.mrf.mxu0  ;;  %v710_v18 = vpop.f32.mrf.mxu1 }
 0x142   : > { %v695_v1 = vadd.f32 %v934_v63, %v694_v62 }
 0x143   : > { %v936_v2 = vpop.f32.mrf.mxu0  ;;  %v1011_v23 = vpop.f32.mrf.mxu1 }
 0x144   : > { %743 = vst [vmem:[%s1434_s17 + $0x28] sm:$0xff] %v695_v1  ;;  %v937_v4 = vadd.f32 %v936_v2, %v935_v0 }
 0x145   : > { %v938_v5 = vpop.f32.mrf.mxu0  ;;  %v723_v28 = vpop.f32.mrf.mxu1 }
 0x146   : > { %v700_v6 = vadd.f32 %v1003_v47, %v937_v4 }
 0x147   : > { %v939_v7 = vpop.f32.mrf.mxu0  ;;  %v1012_v33 = vpop.f32.mrf.mxu1 }
 0x148   : > { %744 = vst [vmem:[%s1434_s17 + $0x30] sm:$0xff] %v700_v6  ;;  %v940_v9 = vadd.f32 %v939_v7, %v938_v5 }
 0x149   : > { %v941_v10 = vpop.f32.mrf.mxu0  ;;  %v726_v38 = vpop.f32.mrf.mxu1 }
 0x14a   : > { %v703_v11 = vadd.f32 %v1004_v57, %v940_v9 }
 0x14b   : > { %v942_v12 = vpop.f32.mrf.mxu0 }
 0x14c   : > { %745 = vst [vmem:[%s1434_s17 + $0x38] sm:$0xff] %v703_v11  ;;  %v943_v14 = vadd.f32 %v942_v12, %v941_v10 }
 0x14d   : > { %v944_v15 = vpop.f32.mrf.mxu0 }
 0x14e   : > { %v708_v16 = vadd.f32 %v943_v14, %v707_v8 }
 0x14f   : > { %v945_v17 = vpop.f32.mrf.mxu0 }
 0x150   : > { %746 = vst [vmem:[%s1434_s17 + $0x40] sm:$0xff] %v708_v16  ;;  %v946_v19 = vadd.f32 %v945_v17, %v944_v15 }
 0x151   : > { %v947_v20 = vpop.f32.mrf.mxu0 }
 0x152   : > { %v711_v21 = vadd.f32 %v946_v19, %v710_v18 }
 0x153   : > { %v948_v22 = vpop.f32.mrf.mxu0 }
 0x154   : > { %747 = vst [vmem:[%s1434_s17 + $0x48] sm:$0xff] %v711_v21  ;;  %v949_v24 = vadd.f32 %v948_v22, %v947_v20 }
 0x155   : > { %v950_v25 = vpop.f32.mrf.mxu0 }
 0x156   : > { %v716_v26 = vadd.f32 %v1007_v3, %v949_v24 }
 0x157   : > { %v951_v27 = vpop.f32.mrf.mxu0 }
 0x158   : > { %748 = vst [vmem:[%s1434_s17 + $0x50] sm:$0xff] %v716_v26  ;;  %v952_v29 = vadd.f32 %v951_v27, %v950_v25 }
 0x159   : > { %v953_v30 = vpop.f32.mrf.mxu0 }
 0x15a   : > { %v719_v31 = vadd.f32 %v1008_v13, %v952_v29 }
 0x15b   : > { %v954_v32 = vpop.f32.mrf.mxu0 }
 0x15c   : > { %749 = vst [vmem:[%s1434_s17 + $0x58] sm:$0xff] %v719_v31  ;;  %v955_v34 = vadd.f32 %v954_v32, %v953_v30 }
 0x15d   : > { %v956_v35 = vpop.f32.mrf.mxu0 }
 0x15e   : > { %v724_v36 = vadd.f32 %v955_v34, %v723_v28 }
 0x15f   : > { %v957_v37 = vpop.f32.mrf.mxu0 }
 0x160   : > { %750 = vst [vmem:[%s1434_s17 + $0x60] sm:$0xff] %v724_v36  ;;  %v958_v39 = vadd.f32 %v957_v37, %v956_v35 }
 0x161   : > { %v959_v40 = vpop.f32.mrf.mxu0 }
 0x162   : > { %v727_v41 = vadd.f32 %v958_v39, %v726_v38 }
 0x163   : > { %v960_v42 = vpop.f32.mrf.mxu0 }
 0x164   : > { %751 = vst [vmem:[%s1434_s17 + $0x68] sm:$0xff] %v727_v41  ;;  %v961_v43 = vadd.f32 %v960_v42, %v959_v40 }
 0x165   : > { %v962_v44 = vpop.f32.mrf.mxu0 }
 0x166   : > { %v732_v45 = vadd.f32 %v1011_v23, %v961_v43 }
 0x167   : > { %v963_v46 = vpop.f32.mrf.mxu0 }
 0x168   : > { %752 = vst [vmem:[%s1434_s17 + $0x70] sm:$0xff] %v732_v45  ;;  %v964_v47 = vadd.f32 %v963_v46, %v962_v44 }
 0x16a   : > { %v735_v48 = vadd.f32 %v1012_v33, %v964_v47 }
 0x16c   : > { %753 = vst [vmem:[%s1434_s17 + $0x78] sm:$0xff] %v735_v48 }
 0x16d   : > { %1173 = shalt.err (!%p1170_p0)
}
 0x16e   : > { %s1174_s3 = scalar_lea.hbm %s1456_s19, 2048  ;;  %s1178_s7 = scalar_lea.hbm %s1503_s2, 8192 }
 0x16f   : > { %p1175_p5 = scmp.ne.s32.totalorder %s1456_s19, %s1174_s3  ;;  %p1179_p4 = scmp.lt.s32.totalorder %s1456_s19, %s1503_s2 }
 0x170   : > { %p1180_p6 = scmp.lt.s32.totalorder %s1178_s7, %s1174_s3 }
 0x171   : > { %p1176_p2 = pnand %p1175_p5, %p1521_p10 }
 0x172   : > { %p1181_p8 = por %p1180_p6, %p1179_p4 }
 0x173   : > { %p1177_p1 = pneg %p1176_p2 }
 0x175   : > { %p1182_p3 = pnand %p1181_p8, %p1177_p1 }
 0x177   : > { %1185 = shalt.err (!%p1182_p3)
}
 0x178   : > { %s1235_s24 = smov 128   ;;  %s1236_s15 = smov 8  }
 0x179   : > { %1019 = dma.vmem_to_hbm [thread:$0]  (%p1521_p10), %s1458_s26, 2048, %s1456_s19, %s755_s20, %s1235_s24, %s1235_s24, %s1236_s15  }
 0x17a PF: > { %p1036_p7 = scmp.ge.s32.totalorder %s1228_s12, 2  ;;  %s783_s17 = sand.u32 1, %s1216_s9  }
 0x17b   : > { %p1522_p9 = scmp.ne.s32.totalorder %s1509_s16, 0  ;;  %s784_s25 = scalar_lea.sflag [#allocation4], %s783_s17 }
 0x17d   : > { %p1030_p11 = pnand %p1036_p7, %p1522_p9 }
 0x17f   : > { %p1031_p12 = pneg %p1030_p11 }
 0x181   : > { %1211 = dma.done.wait (%p1031_p12), %s784_s25, 2048  }
 0x182   : > { %1213 = vsyncadd (%p1031_p12), %s784_s25, 4294965248  ;;  %p16_p13 = scmp.ge.s32.totalorder %s1305_s21, 6   ;;  %s1523_s9 = smov %s1220_s10 }
 0x183   : > { %s1524_s10 = smov %s1224_s11  ;;  %s1525_s11 = smov %s1325_s29 }
 0x184   : > { %s1526_s12 = smov %s1305_s21  ;;  %18 = sbr.rel (!%p16_p13) target bundleno = 6 (0x6), region = 77 }
 0x189   :  { %789 = vsyncpa [#allocation3], 1 }
 0x18a   :  { %791 = vsyncpa [#allocation3 + $0x1], 1 }
 0x18b   :  { %792 = vsyncpa [#allocation6], 1 }
 0x18c   :  { %793 = vsyncpa [#allocation4], 1 }
 0x18d   :  { %795 = vsyncpa [#allocation4 + $0x1], 1 }

</bundles_post_ra>
